<compile_context>
chip_gen: v5e
topology: v5e:2x2
jax: 0.10.0
libtpu: 0.0.40
codegen_flags: <defaults>
</compile_context>

<pallas_src>
import functools

import jax
import jax.numpy as jnp
from jax.experimental import pallas as pl
from jax.experimental.pallas import tpu as pltpu


def _cnn_block_kernel(x_ref, w_ref, scale_ref, bias_ref, o_ref, *,
                      nb, h, out_h, pad_h, kh, wcin, ncout, activation):
    # x_ref:     (nb, H, W*Cin)           input rows, W and Cin fused into lanes
    # w_ref:     (kh, W*Cin, out_W*Cout)  banded conv weights (W-conv + W-padding
    #                                     folded into a dense matmul RHS per tap)
    # scale_ref: (1, out_W*Cout)          folded BN scale, tiled to output lanes
    # bias_ref:  (1, out_W*Cout)          folded conv-bias + BN shift
    # o_ref:     (nb, out_H, out_W*Cout)  lane-dense output block
    x = x_ref[...]                                       # (nb, h, wcin)
    if pad_h > 0:
        # H-direction halo built in VMEM (no HBM-level jnp.pad in the wrapper).
        zrow = jnp.zeros((nb, pad_h, wcin), x.dtype)
        x = jnp.concatenate([zrow, x, zrow], axis=1)     # (nb, h + 2*pad_h, wcin)

    acc = jnp.zeros((nb * out_h, ncout), jnp.float32)
    for ky in range(kh):                                 # kh MXU pushes, K = W*Cin
        rows = x[:, ky:ky + out_h, :].reshape(nb * out_h, wcin)
        acc = acc + jnp.dot(rows, w_ref[ky],
                            preferred_element_type=jnp.float32)

    y = acc * scale_ref[...] + bias_ref[...]             # fused BatchNorm (eval)
    if activation:
        y = jnp.maximum(y, 0.0)                          # ReLU
    o_ref[...] = y.reshape(nb, out_h, ncout).astype(o_ref.dtype)


def _pick_batch_block(n, out_h):
    # Several images per grid step amortize the ~0.35 us per-step overhead, but
    # keep >= 2 grid steps (v7x megacore) and only merge batches when out_h is
    # sublane-aligned so the (nb, out_h) -> nb*out_h reshape is free.
    if out_h % 8 != 0:
        return 1
    for nb in (8, 4, 2):
        if n % nb == 0 and n // nb >= 2:
            return nb
    return 1


def cnn_block(x_nchw, conv_w, conv_b, bn_gamma, bn_beta, bn_mean, bn_var, *,
              stride=1, padding=1, eps=1e-5, activation=True,
              compute_dtype=jnp.bfloat16):
    """CNNBlock forward.  x_nchw: (N, Cin, H, W) f32 -> (N, Cout, out_H, out_W) f32."""
    n, cin, h, w = x_nchw.shape
    cout, cin_w, kh, kw = conv_w.shape
    assert cin == cin_w, "in_channels mismatch"
    assert stride == 1, "only stride=1 implemented"  # TODO(synk): strided/dilated conv
    pad_h = pad_w = int(padding)
    out_h = h + 2 * pad_h - kh + 1
    out_w = w + 2 * pad_w - kw + 1
    wcin = w * cin
    ncout = out_w * cout

    # --- wrapper glue: one fused layout copy in, one copy out (no jnp.pad) ----
    # NCHW -> (N, H, W*Cin): W and Cin fused into the lane dimension.
    x_rows = jnp.transpose(x_nchw, (0, 2, 3, 1)).reshape(n, h, wcin)
    x_rows = x_rows.astype(compute_dtype)

    # Banded weights:
    #   band[ky, xs*Cin+ci, xo*Cout+co] = conv_w[co, ci, ky, xs - xo + pad_w]
    # zero where the tap falls outside the kernel window (W-padding folded in).
    wt = jnp.transpose(conv_w, (2, 3, 1, 0)).astype(jnp.float32)   # (kh, kw, cin, cout)
    xs = jnp.arange(w)[:, None]
    xo = jnp.arange(out_w)[None, :]
    kx = xs - xo + pad_w                                           # (w, out_w)
    valid = (kx >= 0) & (kx < kw)
    band = wt[:, jnp.clip(kx, 0, kw - 1), :, :]                    # (kh, w, out_w, cin, cout)
    band = jnp.where(valid[None, :, :, None, None], band, 0.0)
    band = jnp.transpose(band, (0, 1, 3, 2, 4)).reshape(kh, wcin, ncout)
    band = band.astype(compute_dtype)

    # Conv bias + eval-mode BatchNorm fold into one per-channel affine, tiled to
    # the lane-dense (out_W*Cout) layout.  Kept f32 (v5e VPU has no bf16).
    scale = bn_gamma / jnp.sqrt(bn_var + eps)
    bias = bn_beta + (conv_b - bn_mean) * scale
    scale_row = jnp.tile(scale, out_w).reshape(1, ncout).astype(jnp.float32)
    bias_row = jnp.tile(bias, out_w).reshape(1, ncout).astype(jnp.float32)

    nb = _pick_batch_block(n, out_h)
    grid = (n // nb,)

    kernel = functools.partial(
        _cnn_block_kernel, nb=nb, h=h, out_h=out_h, pad_h=pad_h, kh=kh,
        wcin=wcin, ncout=ncout, activation=activation)

    # Explicit VMEM budget (safe on v5e/v6e 128 MiB and v7x 64 MiB physical).
    # TODO(synk): for large maps / channel counts add an out_h row-band grid axis.
    vmem_limit = 32 * 1024 * 1024

    out = pl.pallas_call(
        kernel,
        out_shape=jax.ShapeDtypeStruct((n, out_h, ncout), jnp.float32),
        grid=grid,
        in_specs=[
            pl.BlockSpec((nb, h, wcin), lambda b: (b, 0, 0)),
            pl.BlockSpec((kh, wcin, ncout), lambda b: (0, 0, 0)),
            pl.BlockSpec((1, ncout), lambda b: (0, 0)),
            pl.BlockSpec((1, ncout), lambda b: (0, 0)),
        ],
        out_specs=pl.BlockSpec((nb, out_h, ncout), lambda b: (b, 0, 0)),
        compiler_params=pltpu.CompilerParams(
            dimension_semantics=("parallel",),
            vmem_limit_bytes=vmem_limit),
    )(x_rows, band, scale_row, bias_row)

    # Lane-dense (N, out_H, out_W*Cout) -> NCHW to match nn.Module semantics.
    # TODO(synk): skip this transpose if the downstream consumer accepts NHWC.
    out = out.reshape(n, out_h, out_w, cout)
    return jnp.transpose(out, (0, 3, 1, 2))


def _reference(x, conv_w, conv_b, gamma, beta, mean, var, *, padding, eps, activation):
    y = jax.lax.conv_general_dilated(
        x, conv_w, window_strides=(1, 1),
        padding=((padding, padding), (padding, padding)),
        dimension_numbers=("NCHW", "OIHW", "NCHW"))
    y = y + conv_b[None, :, None, None]
    y = (y - mean[None, :, None, None]) / jnp.sqrt(var + eps)[None, :, None, None]
    y = y * gamma[None, :, None, None] + beta[None, :, None, None]
    if activation:
        y = jnp.maximum(y, 0.0)
    return y


if __name__ == "__main__":
    # Small shapes consistent with the module: Conv2d(4 -> 8, k=3, padding=1).
    N, CIN, COUT, H, W, KH, KW, PAD = 2, 4, 8, 16, 16, 3, 3, 1
    EPS = 1e-5

    key = jax.random.PRNGKey(0)
    kx_, kw_, kb, kg, kbe = jax.random.split(key, 5)

    x = jax.random.normal(kx_, (N, CIN, H, W), jnp.float32)
    conv_w = 0.1 * jax.random.normal(kw_, (COUT, CIN, KH, KW), jnp.float32)
    conv_b = 0.1 * jax.random.normal(kb, (COUT,), jnp.float32)
    # BatchNorm2d params (eval mode); gamma/beta perturbed so the affine is nontrivial.
    bn_gamma = 1.0 + 0.1 * jax.random.normal(kg, (COUT,), jnp.float32)
    bn_beta = 0.1 * jax.random.normal(kbe, (COUT,), jnp.float32)
    bn_mean = jnp.zeros((COUT,), jnp.float32)   # PyTorch running_mean init
    bn_var = jnp.ones((COUT,), jnp.float32)     # PyTorch running_var init

    out = cnn_block(x, conv_w, conv_b, bn_gamma, bn_beta, bn_mean, bn_var,
                    padding=PAD, eps=EPS, activation=True)
    out = jax.block_until_ready(out)

    # Reference uses the same bf16 rounding of x / conv weights as the kernel's
    # compute dtype so the check isolates kernel correctness (accumulation and
    # the BN/ReLU path are f32 on both sides).
    x_q = x.astype(jnp.bfloat16).astype(jnp.float32)
    w_q = conv_w.astype(jnp.bfloat16).astype(jnp.float32)
    ref = _reference(x_q, w_q, conv_b, bn_gamma, bn_beta, bn_mean, bn_var,
                     padding=PAD, eps=EPS, activation=True)

    assert out.shape == (N, COUT, H, W)
    err = jnp.max(jnp.abs(out - ref))
    assert jnp.allclose(out, ref, atol=2e-3, rtol=2e-3), f"max abs err {err}"

    print("KERNEL_OK")
</pallas_src>

<mosaic_0001>
module attributes {stable_mosaic.version = 11 : i64} {
  func.func @_cnn_block_kernel(%arg0: i32, %arg1: memref<1x16x64xbf16, #tpu.memory_space<vmem>>, %arg2: memref<3x64x128xbf16, #tpu.memory_space<vmem>>, %arg3: memref<1x128xf32, #tpu.memory_space<vmem>>, %arg4: memref<1x128xf32, #tpu.memory_space<vmem>>, %arg5: memref<1x16x128xf32, #tpu.memory_space<vmem>>) attributes {dimension_semantics = [#tpu.dimension_semantics<parallel>], iteration_bounds = array<i64: 2>, scalar_prefetch = 0 : i64, scratch_operands = 0 : i64, tpu.core_type = #tpu.core_type<tc>, window_params = [{transform_indices = @transform_0, window_bounds = array<i64: 1, 16, 64>}, {pipeline_mode = #tpu.pipeline_mode<synchronous>, transform_indices = @transform_1, window_bounds = array<i64: 3, 64, 128>}, {pipeline_mode = #tpu.pipeline_mode<synchronous>, transform_indices = @transform_2, window_bounds = array<i64: 1, 128>}, {pipeline_mode = #tpu.pipeline_mode<synchronous>, transform_indices = @transform_3, window_bounds = array<i64: 1, 128>}, {transform_indices = @transform_4, window_bounds = array<i64: 1, 16, 128>}]} {
    %c0 = arith.constant 0 : index
    %c0_0 = arith.constant 0 : index
    %c0_1 = arith.constant 0 : index
    %0 = vector.load %arg1[%c0, %c0_0, %c0_1] : memref<1x16x64xbf16, #tpu.memory_space<vmem>>, vector<1x16x64xbf16>
    %cst = arith.constant 0.000000e+00 : bf16
    %1 = vector.broadcast %cst : bf16 to vector<1x1x64xbf16>
    %2 = tpu.concatenate %1, %0, %1 in 1 : vector<1x1x64xbf16>, vector<1x16x64xbf16>, vector<1x1x64xbf16> -> vector<1x18x64xbf16>
    %cst_2 = arith.constant 0.000000e+00 : f32
    %3 = vector.broadcast %cst_2 : f32 to vector<16x128xf32>
    %4 = vector.extract_strided_slice %2 {offsets = [0, 0, 0], sizes = [1, 16, 64], strides = [1, 1, 1]} : vector<1x18x64xbf16> to vector<1x16x64xbf16>
    %5 = vector.shape_cast %4 : vector<1x16x64xbf16> to vector<16x64xbf16>
    %c0_3 = arith.constant 0 : index
    %c0_4 = arith.constant 0 : index
    %c0_5 = arith.constant 0 : index
    %6 = vector.load %arg2[%c0_3, %c0_4, %c0_5] : memref<3x64x128xbf16, #tpu.memory_space<vmem>>, vector<1x64x128xbf16>
    %7 = vector.shape_cast %6 : vector<1x64x128xbf16> to vector<64x128xbf16>
    %cst_6 = arith.constant dense<0.000000e+00> : vector<16x128xf32>
    %8 = tpu.matmul %5, %7, %cst_6 {dimension_numbers = #tpu.dot_dimension_numbers<[1], [0], [0], [1], [0, 0, 1, 1], [], []>} : vector<16x64xbf16>, vector<64x128xbf16>, vector<16x128xf32> -> vector<16x128xf32>
    %9 = arith.addf %3, %8 : vector<16x128xf32>
    %10 = vector.extract_strided_slice %2 {offsets = [0, 1, 0], sizes = [1, 16, 64], strides = [1, 1, 1]} : vector<1x18x64xbf16> to vector<1x16x64xbf16>
    %11 = vector.shape_cast %10 : vector<1x16x64xbf16> to vector<16x64xbf16>
    %c1 = arith.constant 1 : index
    %c0_7 = arith.constant 0 : index
    %c0_8 = arith.constant 0 : index
    %12 = vector.load %arg2[%c1, %c0_7, %c0_8] : memref<3x64x128xbf16, #tpu.memory_space<vmem>>, vector<1x64x128xbf16>
    %13 = vector.shape_cast %12 : vector<1x64x128xbf16> to vector<64x128xbf16>
    %cst_9 = arith.constant dense<0.000000e+00> : vector<16x128xf32>
    %14 = tpu.matmul %11, %13, %cst_9 {dimension_numbers = #tpu.dot_dimension_numbers<[1], [0], [0], [1], [0, 0, 1, 1], [], []>} : vector<16x64xbf16>, vector<64x128xbf16>, vector<16x128xf32> -> vector<16x128xf32>
    %15 = arith.addf %9, %14 : vector<16x128xf32>
    %16 = vector.extract_strided_slice %2 {offsets = [0, 2, 0], sizes = [1, 16, 64], strides = [1, 1, 1]} : vector<1x18x64xbf16> to vector<1x16x64xbf16>
    %17 = vector.shape_cast %16 : vector<1x16x64xbf16> to vector<16x64xbf16>
    %c2 = arith.constant 2 : index
    %c0_10 = arith.constant 0 : index
    %c0_11 = arith.constant 0 : index
    %18 = vector.load %arg2[%c2, %c0_10, %c0_11] : memref<3x64x128xbf16, #tpu.memory_space<vmem>>, vector<1x64x128xbf16>
    %19 = vector.shape_cast %18 : vector<1x64x128xbf16> to vector<64x128xbf16>
    %cst_12 = arith.constant dense<0.000000e+00> : vector<16x128xf32>
    %20 = tpu.matmul %17, %19, %cst_12 {dimension_numbers = #tpu.dot_dimension_numbers<[1], [0], [0], [1], [0, 0, 1, 1], [], []>} : vector<16x64xbf16>, vector<64x128xbf16>, vector<16x128xf32> -> vector<16x128xf32>
    %21 = arith.addf %15, %20 : vector<16x128xf32>
    %c0_13 = arith.constant 0 : index
    %c0_14 = arith.constant 0 : index
    %22 = vector.load %arg3[%c0_13, %c0_14] : memref<1x128xf32, #tpu.memory_space<vmem>>, vector<1x128xf32>
    %23 = vector.broadcast %22 : vector<1x128xf32> to vector<16x128xf32>
    %24 = arith.mulf %21, %23 : vector<16x128xf32>
    %c0_15 = arith.constant 0 : index
    %c0_16 = arith.constant 0 : index
    %25 = vector.load %arg4[%c0_15, %c0_16] : memref<1x128xf32, #tpu.memory_space<vmem>>, vector<1x128xf32>
    %26 = vector.broadcast %25 : vector<1x128xf32> to vector<16x128xf32>
    %27 = arith.addf %24, %26 : vector<16x128xf32>
    %cst_17 = arith.constant 0.000000e+00 : f32
    %28 = vector.broadcast %cst_17 : f32 to vector<16x128xf32>
    %29 = arith.maximumf %27, %28 : vector<16x128xf32>
    %30 = vector.shape_cast %29 : vector<16x128xf32> to vector<1x16x128xf32>
    %c0_18 = arith.constant 0 : index
    %c0_19 = arith.constant 0 : index
    %c0_20 = arith.constant 0 : index
    %31 = vector.load %arg5[%c0_18, %c0_19, %c0_20] : memref<1x16x128xf32, #tpu.memory_space<vmem>>, vector<1x16x128xf32>
    tpu.vector_store %arg5[%c0_18, %c0_19, %c0_20], %30 {strides = array<i32>} : memref<1x16x128xf32, #tpu.memory_space<vmem>>, vector<1x16x128xf32>,
    return
  }
  func.func @transform_0(%arg0: i32) -> (i32, i32, i32) {
    %c0_i32 = arith.constant 0 : i32
    %c0_i32_0 = arith.constant 0 : i32
    %c0_i32_1 = arith.constant 0 : i32
    return %arg0, %c0_i32, %c0_i32_0 : i32, i32, i32
  }
  func.func @transform_1(%arg0: i32) -> (i32, i32, i32) {
    %c0_i32 = arith.constant 0 : i32
    %c0_i32_0 = arith.constant 0 : i32
    %c0_i32_1 = arith.constant 0 : i32
    %c0_i32_2 = arith.constant 0 : i32
    return %c0_i32, %c0_i32_0, %c0_i32_1 : i32, i32, i32
  }
  func.func @transform_2(%arg0: i32) -> (i32, i32) {
    %c0_i32 = arith.constant 0 : i32
    %c0_i32_0 = arith.constant 0 : i32
    %c0_i32_1 = arith.constant 0 : i32
    return %c0_i32, %c0_i32_0 : i32, i32
  }
  func.func @transform_3(%arg0: i32) -> (i32, i32) {
    %c0_i32 = arith.constant 0 : i32
    %c0_i32_0 = arith.constant 0 : i32
    %c0_i32_1 = arith.constant 0 : i32
    return %c0_i32, %c0_i32_0 : i32, i32
  }
  func.func @transform_4(%arg0: i32) -> (i32, i32, i32) {
    %c0_i32 = arith.constant 0 : i32
    %c0_i32_0 = arith.constant 0 : i32
    %c0_i32_1 = arith.constant 0 : i32
    return %arg0, %c0_i32, %c0_i32_0 : i32, i32, i32
  }
}

</mosaic_0001>

<bundles_post_ra>
// kernel: tpu_custom_call.1
= control target key start
LH: loop header
LB: loop body
LE: loop exit
PB: predicated region body
PF: predicated region fallthrough
CT: control target
= control target key end

     0   :  { %9 = vsyncpa [#allocation3], 0  ;;  %s1004_s0 = inlined_call_operand.hbm [shape: bf16[2,16,64], index: 0, kind: input, shape index: {}]   ;;  %s1005_s1 = inlined_call_operand.hbm [shape: bf16[3,64,128], index: 1, kind: input, shape index: {}]   ;;  %s1006_s2 = inlined_call_operand.vmem [shape: f32[1,128], index: 2, kind: input, shape index: {}]   ;;  %s1007_s3 = inlined_call_operand.vmem [shape: f32[1,128], index: 3, kind: input, shape index: {}]   ;;  %s1008_s4 = inlined_call_operand.hbm [shape: f32[2,16,128], index: 4, kind: output, shape index: {}]  }
   0x1   :  { %11 = vsyncpa [#allocation3 + $0x1], 0 }
   0x2   :  { %12 = vsyncpa [#allocation6], 0 }
   0x3   :  { %13 = vsyncpa [#allocation4], 0 }
   0x4   :  { %15 = vsyncpa [#allocation4 + $0x1], 0  ;;  %s853_s15 = smov 0   ;;  %s855_s16 = smov 0  }
   0x5   :  { %s857_s17 = smov 0   ;;  %s859_s18 = smov 0  }
   0x6 LB: > { %s874_s19 = sadd.s32 4294967295, %s821_s18   ;;  %s542_s20 = sadd.s32 4294967294, %s821_s18   ;;  %s821_s18 = sphi %s859_s18, %s1018_s18   ;;  %s817_s17 = sphi %s857_s17, %s1017_s17   ;;  %s813_s16 = sphi %s855_s16, %s1016_s16   ;;  %s809_s15 = sphi %s853_s15, %s1015_s15  }
   0x7   : > { %p41_p0 = scmp.ne.s32.totalorder %s813_s16, %s809_s15  ;;  %p42_p1 = scmp.eq.s32.totalorder %s874_s19, 0 }
   0x8   : > { %p128_p2 = scmp.eq.s32.totalorder %s874_s19, 1  ;;  %p134_p3 = scmp.eq.s32.totalorder %s542_s20, 1 }
   0x9   : > { %p883_p4 = por %p42_p1, %p41_p0  ;;  %p543_p5 = scmp.ge.s32.totalorder %s821_s18, 1 }
   0xa   : > { %p888_p6 = por %p134_p3, %p41_p0  ;;  %p141_p7 = scmp.lt.s32.totalorder %s821_s18, 3 }
   0xb   : > { %s152_s25 = sshll.u32 %s1005_s1, 4  ;;  %s823_s27 = smov [#allocation5]   ;;  %s153_s25 = int_to_ptr.hbm [resolvable:$true] %s152_s25 }
   0xc   : > { %p896_p8 = pnand %p543_p5, %p141_p7  ;;  %s154_s28 = sshll.u32 %s823_s27, 4  ;;  %s155_s28 = int_to_ptr.vmem [resolvable:$true] %s154_s28 }
   0xd   : > { %s906_s29 = sadd.s32 1, %s821_s18   ;;  %s824_s30 = smov 64  }
   0xe   : > { %p636_p9 = pneg %p896_p8  ;;  %s825_s5 = smov 4  }
   0xf   : > { %s25_s6 = ssub.s32 %s821_s18, %s906_s29  ;;  %s28_s7 = sadd.s32 1, %s817_s17 }
  0x10   : > { %p637_p10 = pnand %p636_p9, %p42_p1  ;;  %p26_p12 = scmp.eq.s32.totalorder %s25_s6, 0 }
  0x11   : > { %p35_p13 = scmp.ne.s32.totalorder %s817_s17, %s813_s16  ;;  %p36_p0 = scmp.eq.s32.totalorder %s821_s18, 0 }
  0x12   : > { %639 = dma.hbm_to_vmem [thread:$0]  (!%p637_p10), %s153_s25, 1536, %s155_s28, [#allocation6], %s824_s30, %s824_s30, %s825_s5  }
  0x13   : > { %s918_s8 = scalar_select %p26_p12, %s817_s17, %s28_s7  }
  0x14   : > { %p922_p3 = por %p128_p2, %p35_p13  ;;  %p649_p5 = scmp.lt.s32.totalorder %s821_s18, 2 }
  0x15   : > { %s174_s10 = sand.u32 1, %s817_s17   ;;  %s613_s11 = sshll.u32 %s821_s18, 3 }
  0x16   : > { %p37_p7 = por %p36_p0, %p35_p13  ;;  %s546_s12 = sshll.u32 %s174_s10, 3 }
  0x17   : > { %s183_s20 = scalar_lea.hbm %s1004_s0, %s613_s11  ;;  %s178_s24 = scalar_lea.vmem [#allocation2], %s546_s12 }
  0x18   : > { %s184_s23 = sshll.u32 %s183_s20, 4  ;;  %s186_s25 = sshll.u32 %s178_s24, 4  ;;  %s185_s23 = int_to_ptr.hbm [resolvable:$true] %s184_s23  ;;  %s187_s25 = int_to_ptr.vmem [resolvable:$true] %s186_s25 }
  0x19   : > { %p932_p9 = pnand %p649_p5, %p37_p7  ;;  %s175_s28 = scalar_lea.sflag [#allocation3], %s174_s10 }
  0x1a   : > { %s721_s6 = sshra.s32 %s185_s23, 4  ;;  %s728_s12 = scalar_lea.hbm %s1004_s0, 16  ;;  %s722_s6 = int_to_ptr.hbm [resolvable:$true] %s721_s6 }
  0x1b   : > { %s723_s7 = scalar_lea.hbm %s722_s6, 8  ;;  %p725_p10 = pneg %p932_p9 }
  0x1c   : > { %p724_p2 = scmp.ne.s32.totalorder %s722_s6, %s723_s7  ;;  %p729_p0 = scmp.lt.s32.totalorder %s722_s6, %s1004_s0 }
  0x1d   : > { %p730_p5 = scmp.lt.s32.totalorder %s728_s12, %s723_s7 }
  0x1e   : > { %p726_p12 = pnand %p725_p10, %p724_p2 }
  0x1f   : > { %p731_p7 = por %p730_p5, %p729_p0 }
  0x20   : > { %p727_p13 = pneg %p726_p12 }
  0x22   : > { %p732_p11 = pnand %p731_p7, %p727_p13 }
  0x24   : > { %735 = shalt.err (!%p732_p11)
}
  0x25   : > { %643 = dma.hbm_to_vmem [thread:$0]  (!%p932_p9), %s185_s23, 128, %s187_s25, %s175_s28, %s824_s30, %s824_s30, %s825_s5  }
  0x26   : > { %198 = sbr.rel (%p896_p8) target bundleno = 216 (0xd8), region = 36  ;;  %s952_s10 = sand.u32 (!%p896_p8), 1, %s813_s16  }
  0x27   : > { %s550_s24 = sshll.u32 (!%p896_p8), %s952_s10, 3  ;;  %s201_s6 = scalar_lea.sflag (!%p896_p8), [#allocation3], %s952_s10 }
  0x28   : > { %s204_s7 = scalar_lea.vmem (!%p896_p8), [#allocation2], %s550_s24 }
  0x2b   : > { %796 = dma.done.wait (%p883_p4), %s201_s6, 128  }
  0x2c   : > { %798 = vsyncadd (%p883_p4), %s201_s6, 4294967168 }
  0x2d   : > { %800 = dma.done.wait (%p42_p1), [#allocation6], 1536  }
  0x2e   : > { %802 = vsyncadd (%p42_p1), [#allocation6], 4294965760  ;;  %v622_v0 = vld [vmem:[#allocation5 + $0x38] sm:$0xff]  ;;  %v621_v3 = vld [vmem:[#allocation5 + $0x30] sm:$0xff]  ;;  %vm252_vm0 = vcmask 1040384   ;;  %vm380_vm3 = vcmask 1046528  }
  0x2f   : > { %v618_v1 = vld [vmem:[#allocation5 + $0x18] sm:$0xff]  ;;  %319 = vmatpush.bf16.msra.mxu0 %v622_v0  ;;  %v617_v4 = vld [vmem:[#allocation5 + $0x10] sm:$0xff]  ;;  %v620_v7 = vld [vmem:[#allocation5 + $0x28] sm:$0xff]  ;;  %vm253_vm1 = vsmask.f32 256  ;;  %vm311_vm4 = vcmask 523264  }
  0x30   : > { %v626_v2 = vld [vmem:[#allocation5 + $0x58] sm:$0xff]  ;;  %359 = vmatpush.bf16.msra.mxu1 %v618_v1  ;;  %v625_v5 = vld [vmem:[#allocation5 + $0x50] sm:$0xff]  ;;  %v616_v8 = vld [vmem:[#allocation5 + $0x8] sm:$0xff]  ;;  %vm274_vm5 = vsmask.f32 7424  ;;  %s552_s23 = sshll.u32 %s952_s10, 4 }
  0x31   : > { %415 = vmatpush.bf16.msra.mxu2 %v626_v2  ;;  %v614_v6 = vld [vmem:[%s204_s7] sm:$0xff]  ;;  %v624_v11 = vld [vmem:[#allocation5 + $0x48] sm:$0xff]  ;;  %vm254_vm2 = vmand %vm252_vm0, %vm253_vm1  ;;  %s627_s25 = sshll.u32 %s874_s19, 4  ;;  %s234_s27 = scalar_lea.vmem [#allocation7], %s552_s23 }
  0x32   : > { %v244_v9 = vshrl.u32 %v614_v6, 16  ;;  %v247_v10 = vshll.u32 %v614_v6, 16  ;;  %v619_v13 = vld [vmem:[#allocation5 + $0x20] sm:$0xff]  ;;  %v689_v32 = vld [vmem:[%s1006_s2] ss:$0 sm:$0xff]  ;;  %s455_s13 = scalar_lea.hbm %s1008_s4, %s627_s25  ;;  %s456_s12 = sshll.u32 %s234_s27, 4  ;;  %s457_s12 = int_to_ptr.vmem [resolvable:$true] %s456_s12 }
  0x33   : > { %320 = vmatpush.bf16.msra.mxu0 %v621_v3  ;;  %v615_v14 = vld [vmem:[#allocation5] sm:$0xff]  ;;  %v690_v35 = vld [vmem:[%s1007_s3] ss:$0 sm:$0xff]  ;;  %s458_s14 = sshll.u32 %s455_s13, 4  ;;  %s444_s19 = scalar_lea.sflag [#allocation4], %s952_s10  ;;  %s459_s14 = int_to_ptr.hbm [resolvable:$true] %s458_s14 }
  0x34   : > { %360 = vmatpush.bf16.msra.mxu1 %v617_v4  ;;  %v246_v12 = vrot.slane %v244_v9, 7  ;;  %v623_v17 = vld [vmem:[#allocation5 + $0x40] sm:$0xff]  ;;  %s765_s20 = sshra.s32 %s459_s14, 4  ;;  %s771_s21 = scalar_lea.hbm %s1008_s4, 32  ;;  %s766_s20 = int_to_ptr.hbm [resolvable:$true] %s765_s20 }
  0x35   : > { %416 = vmatpush.bf16.msra.mxu2 %v625_v5  ;;  %s767_s24 = scalar_lea.hbm %s766_s20, 16  ;;  %p772_p11 = scmp.lt.s32.totalorder %s766_s20, %s1008_s4 }
  0x36   : > { %v249_v15 = vor.u32 %v247_v10, %v246_v12  ;;  %v256_v16 = vsel %vm254_vm2, %v246_v12, 0  ;;  %p768_p1 = scmp.ne.s32.totalorder %s766_s20, %s767_s24  ;;  %p773_p9 = scmp.lt.s32.totalorder %s771_s21, %s767_s24 }
  0x37   : > { %321 = vmatpush.bf16.msra.mxu0 %v620_v7  ;;  %v283_v18 = vshll.u32 %v256_v16, 16  ;;  %v382_v19 = vrot.slane %v256_v16, 1 }
  0x38   : > { %361 = vmatpush.bf16.msra.mxu1 %v616_v8  ;;  %v255_v20 = vsel %vm254_vm2, 0, %v249_v15  ;;  %p769_p4 = pnand %p768_p1, %p922_p3  ;;  %p774_p2 = por %p773_p9, %p772_p11 }
  0x39   : > { %417 = vmatpush.bf16.msra.mxu2 %v624_v11  ;;  %v276_v21 = vshrl.u32 %v255_v20, 16  ;;  %v278_v22 = vshll.u32 %v255_v20, 16  ;;  %v381_v23 = vrot.slane %v255_v20, 1  ;;  %v285_v25 = vrot.slane %v283_v18, 1 }
  0x3a   : > { %p770_p8 = pneg %p769_p4 }
  0x3b   : > { %322 = vmatpush.bf16.msra.mxu0 %v619_v13  ;;  %v280_v24 = vrot.slane %v278_v22, 1  ;;  %v383_v26 = vsel %vm380_vm3, %v381_v23, %v382_v19 }
  0x3c   : > { %362 = vmatpush.bf16.msra.mxu1 %v615_v14  ;;  %p775_p10 = pnand %p774_p2, %p770_p8 }
  0x3d   : > { %418 = vmatpush.bf16.msra.mxu2 %v623_v17  ;;  %v281_v27 = vor.u32 %v280_v24, %v276_v21 }
  0x3f   : > { %590 = vmatmul.msk.bf16.vlgmr.msra.gmra.mxu1 %vm311_vm4, %v255_v20  ;;  %v286_v28 = vsel %vm274_vm5, %v281_v27, %v285_v25 }
  0x40   : > { %607 = vmatmul.msk.bf16.vlgmr.msra.gmra.mxu2 %vm311_vm4, %v383_v26  ;;  %573 = vmatmul.msk.bf16.vlgmr.msra.gmra.mxu0 %vm311_vm4, %v286_v28 }
  0xbc   : > { %v364_v29 = vpop.f32.mrf.mxu1 }
  0xbd   : > { %v324_v30 = vpop.f32.mrf.mxu0 }
  0xbe   : > { %v365_v31 = vadd.f32 %v364_v29, %v324_v30 }
  0xc3   : > { %v420_v33 = vpop.f32.mrf.mxu2 }
  0xc4   : > { %v425_v34 = vadd.f32 %v420_v33, %v365_v31  ;;  %v366_v38 = vpop.f32.mrf.mxu1 }
  0xc5   : > { %v326_v37 = vpop.f32.mrf.mxu0 }
  0xc6   : > { %v431_v36 = vmul.f32 %v689_v32, %v425_v34  ;;  %v367_v41 = vadd.f32 %v366_v38, %v326_v37 }
  0xc8   : > { %v437_v39 = vadd.f32 %v690_v35, %v431_v36 }
  0xca   : > { %v439_v40 = vmax.f32 %v437_v39, 0.0 }
  0xcb   : > { %v422_v42 = vpop.f32.mrf.mxu2 }
  0xcc   : > { %441 = vst [vmem:[%s234_s27] sm:$0xff] %v439_v40  ;;  %v426_v43 = vadd.f32 %v422_v42, %v367_v41 }
  0xce   : > { %v432_v44 = vmul.f32 %v689_v32, %v426_v43 }
  0xd0   : > { %v438_v45 = vadd.f32 %v690_v35, %v432_v44 }
  0xd2   : > { %v440_v46 = vmax.f32 %v438_v45, 0.0 }
  0xd4   : > { %442 = vst [vmem:[%s234_s27 + $0x8] sm:$0xff] %v440_v46 }
  0xd5   : > { %778 = shalt.err (!%p775_p10)
}
  0xd6   : > { %s826_s10 = smov 128   ;;  %s827_s5 = smov 8  }
  0xd7   : > { %634 = dma.vmem_to_hbm [thread:$0]  (%p922_p3), %s457_s12, 256, %s459_s14, %s444_s19, %s826_s10, %s826_s10, %s827_s5  }
  0xd8 PF: > { %s473_s23 = sand.u32 1, %s809_s15   ;;  %p1014_p12 = scmp.ge.s32.totalorder %s821_s18, 2 }
  0xd9   : > { %s474_s25 = scalar_lea.sflag [#allocation4], %s473_s23 }
  0xda   : > { %p645_p13 = pnand %p1014_p12, %p888_p6 }
  0xdc   : > { %p646_p0 = pneg %p645_p13 }
  0xde   : > { %804 = dma.done.wait (%p646_p0), %s474_s25, 256  }
  0xdf   : > { %806 = vsyncadd (%p646_p0), %s474_s25, 4294967040  ;;  %p18_p5 = scmp.ge.s32.totalorder %s906_s29, 4   ;;  %s1015_s15 = smov %s813_s16 }
  0xe0   : > { %s1016_s16 = smov %s817_s17  ;;  %s1017_s17 = smov %s918_s8 }
  0xe1   : > { %s1018_s18 = smov %s906_s29  ;;  %20 = sbr.rel (!%p18_p5) target bundleno = 6 (0x6), region = 87 }
  0xe6   :  { %480 = vsyncpa [#allocation3], 1 }
  0xe7   :  { %482 = vsyncpa [#allocation3 + $0x1], 1 }
  0xe8   :  { %483 = vsyncpa [#allocation6], 1 }
  0xe9   :  { %484 = vsyncpa [#allocation4], 1 }
  0xea   :  { %486 = vsyncpa [#allocation4 + $0x1], 1 }

</bundles_post_ra>
